<compile_context>
chip_gen: v6e
topology: v6e:2x2x1
jax: 0.10.0
libtpu: 0.0.40
codegen_flags: <defaults>
</compile_context>

<pallas_src>
import functools

import jax
import jax.numpy as jnp
from jax.experimental import pallas as pl
from jax.experimental.pallas import tpu as pltpu

EPS = 1e-5  # nn.LayerNorm default eps


def _const_spec(shape):
    """Whole-array parameter block: same block every grid step, single-buffered
    (constant index_map -> double buffering gives zero overlap, 2x VMEM)."""
    zeros = (0,) * len(shape)
    return pl.BlockSpec(shape, lambda *_: zeros, pipeline_mode=pl.Buffered(1))


# ----------------------------------------------------------------------------
# Kernel 1: fused Q/K/V projections, computed once per (batch, seq tile).
# Outputs are bf16 so the attention kernel streams half the bytes.
# ----------------------------------------------------------------------------
def qkv_projection_kernel(x_ref, wq_ref, bq_ref, wk_ref, bk_ref, wv_ref, bv_ref,
                          q_ref, k_ref, v_ref):
    f32, bf16 = jnp.float32, jnp.bfloat16
    xb = x_ref[...].astype(bf16)                       # (TS, D)

    def proj(w_ref, b_ref):
        y = jnp.dot(xb, w_ref[...], preferred_element_type=f32) + b_ref[...]
        return y.astype(bf16)

    q_ref[...] = proj(wq_ref, bq_ref)
    k_ref[...] = proj(wk_ref, bk_ref)
    v_ref[...] = proj(wv_ref, bv_ref)


# ----------------------------------------------------------------------------
# Kernel 2: one grid step = one (batch element, query tile).
# Per-head attention (online over the full row), heads concatenated, single
# full-width Wo matmul, residual+LN, FFN, residual+LN.
# ----------------------------------------------------------------------------
def encoder_layer_kernel(
    x_ref, q_ref, k_ref, v_ref,
    wo_ref, bo_ref, ln1_g_ref, ln1_b_ref,
    w1_ref, b1_ref, w2_ref, b2_ref,
    ln2_g_ref, ln2_b_ref,
    out_ref,
    *, num_heads,
):
    f32, bf16 = jnp.float32, jnp.bfloat16

    x = x_ref[...]                         # (TQ, D) f32  — residual input
    q = q_ref[...]                         # (TQ, D) bf16 — pre-projected Q tile
    k = k_ref[...]                         # (S,  D) bf16 — full-sequence K
    v = v_ref[...]                         # (S,  D) bf16 — full-sequence V
    TQ, D = x.shape
    dh = D // num_heads
    scale = 1.0 / float(dh) ** 0.5

    # contract last dim of q against last dim of k (no explicit transpose)
    dn = (((1,), (1,)), ((), ()))

    # Per-head attention.  Softmax math stays f32 (v5e-safe); exp/recip hit EUP.
    # TODO(synk): for production dh>=128 the per-head slices are lane-aligned;
    # at dh<128 a head-leading (B,H,S,dh) K/V layout would avoid lane slices.
    ctx_heads = []
    for h in range(num_heads):             # static unroll, num_heads is small
        sl = slice(h * dh, (h + 1) * dh)
        s = jax.lax.dot_general(q[:, sl], k[:, sl], dn,
                                preferred_element_type=f32) * scale   # (TQ, S)
        s = s - jnp.max(s, axis=-1, keepdims=True)
        p = jnp.exp(s)
        p = p * pl.reciprocal(jnp.sum(p, axis=-1, keepdims=True), approx=True)
        ctx_heads.append(jnp.dot(p.astype(bf16), v[:, sl],
                                 preferred_element_type=f32))         # (TQ, dh)

    # Un-folded output projection: one (TQ,D)@(D,D) matmul, full K=D contraction.
    ctx = jnp.concatenate(ctx_heads, axis=-1).astype(bf16)            # (TQ, D)
    attn = jnp.dot(ctx, wo_ref[...], preferred_element_type=f32) + bo_ref[...]
    # dropout1: identity (eval mode)

    def layernorm(val, g, b):
        mu = jnp.mean(val, axis=-1, keepdims=True)
        var = jnp.mean((val - mu) ** 2, axis=-1, keepdims=True)
        return (val - mu) * jax.lax.rsqrt(var + EPS) * g + b

    out1 = layernorm(x + attn, ln1_g_ref[...], ln1_b_ref[...])        # f32

    # ---- feed forward -------------------------------------------------------
    # TODO(synk): at production FF sizes, stream FF-slices of w1/w2 (extra grid
    # axis or emit_pipeline) to bound peak VMEM on v7x (64 MiB).
    h1 = jnp.dot(out1.astype(bf16), w1_ref[...],
                 preferred_element_type=f32) + b1_ref[...]
    h1 = jnp.maximum(h1, 0.0)
    ff = jnp.dot(h1.astype(bf16), w2_ref[...],
                 preferred_element_type=f32) + b2_ref[...]
    # dropout2: identity (eval mode)

    out_ref[...] = layernorm(out1 + ff, ln2_g_ref[...], ln2_b_ref[...])


# ----------------------------------------------------------------------------
# Wrapper
# ----------------------------------------------------------------------------
def encoder_layer(x, params, num_heads, q_tile=256, s_tile=256):
    B, S, D = x.shape
    FF = params["w1"].shape[1]
    assert D % num_heads == 0
    TQ = min(q_tile, S)
    TS = min(s_tile, S)
    assert S % TQ == 0 and S % TS == 0, "seq_length must divide the tiles"
    nq, ns = S // TQ, S // TS

    bf16 = jnp.bfloat16
    w = {n: params[n].astype(bf16) for n in ("wq", "wk", "wv", "wo", "w1", "w2")}

    vmem_limit = 64 * 1024 * 1024  # sweep per generation; fits all chips here

    # -------------------- pass 1: Q/K/V projections (run once) ---------------
    seq_spec = pl.BlockSpec((pl.Squeezed(), TS, D), lambda b, si: (b, si, 0))
    qkv_sds = jax.ShapeDtypeStruct((B, S, D), bf16)
    qkv_flops = B * S * 3 * 2 * D * D
    qkv_bytes = B * S * D * 4 + 3 * D * D * 2 + 3 * D * 4 + 3 * B * S * D * 2

    q, k, v = pl.pallas_call(
        qkv_projection_kernel,
        out_shape=(qkv_sds, qkv_sds, qkv_sds),
        grid_spec=pltpu.PrefetchScalarGridSpec(
            num_scalar_prefetch=0,
            grid=(B, ns),
            in_specs=[
                seq_spec,
                _const_spec((D, D)), _const_spec((1, D)),   # Wq, bq
                _const_spec((D, D)), _const_spec((1, D)),   # Wk, bk
                _const_spec((D, D)), _const_spec((1, D)),   # Wv, bv
            ],
            out_specs=(seq_spec, seq_spec, seq_spec),
        ),
        compiler_params=pltpu.CompilerParams(
            dimension_semantics=("parallel", "parallel"),
            vmem_limit_bytes=vmem_limit),
        cost_estimate=pl.CostEstimate(
            flops=qkv_flops, transcendentals=0, bytes_accessed=qkv_bytes),
    )(x, w["wq"], params["bq"], w["wk"], params["bk"], w["wv"], params["bv"])

    # -------------------- pass 2: attention + FFN + LayerNorms ---------------
    in_specs = [
        # query-tile of x (residual path, f32)
        pl.BlockSpec((pl.Squeezed(), TQ, D), lambda b, qi: (b, qi, 0)),
        # query-tile of pre-projected Q (bf16)
        pl.BlockSpec((pl.Squeezed(), TQ, D), lambda b, qi: (b, qi, 0)),
        # full-sequence K / V (bf16); constant over inner qi axis -> DMA deduped
        pl.BlockSpec((pl.Squeezed(), S, D), lambda b, qi: (b, 0, 0)),
        pl.BlockSpec((pl.Squeezed(), S, D), lambda b, qi: (b, 0, 0)),
    ]
    args = [x, q, k, v]
    param_layout = [
        (w["wo"], (D, D)), (params["bo"], (1, D)),
        (params["ln1_g"], (1, D)), (params["ln1_b"], (1, D)),
        (w["w1"], (D, FF)), (params["b1"], (1, FF)),
        (w["w2"], (FF, D)), (params["b2"], (1, D)),
        (params["ln2_g"], (1, D)), (params["ln2_b"], (1, D)),
    ]
    for arr, shape in param_layout:
        in_specs.append(_const_spec(shape))
        args.append(arr)

    flops = B * nq * (
        2 * TQ * S * D        # scores over all heads
        + 2 * TQ * S * D      # context over all heads
        + 2 * TQ * D * D      # output projection
        + 2 * TQ * D * FF     # FFN up
        + 2 * TQ * FF * D)    # FFN down
    transcendentals = B * nq * (num_heads * TQ * S + num_heads * TQ + 2 * TQ)
    bytes_accessed = (B * nq * TQ * D * (4 + 2)        # x (f32) + q (bf16) tiles
                      + B * 2 * S * D * 2              # k, v once per batch row
                      + (D * D + 2 * D * FF) * 2       # wo, w1, w2 (single copy)
                      + (6 * D + FF) * 4               # biases + LN params
                      + B * S * D * 4)                 # output (f32)

    kernel = functools.partial(encoder_layer_kernel, num_heads=num_heads)
    # TODO(synk): output could be emitted in bf16 if the consumer accepts it
    # (halves writeback DMA); kept f32 to match the PyTorch module semantics.
    return pl.pallas_call(
        kernel,
        out_shape=jax.ShapeDtypeStruct((B, S, D), jnp.float32),
        grid_spec=pltpu.PrefetchScalarGridSpec(
            num_scalar_prefetch=0,
            grid=(B, nq),   # qi innermost: k/v fetched once per batch element
            in_specs=in_specs,
            out_specs=pl.BlockSpec((pl.Squeezed(), TQ, D),
                                   lambda b, qi: (b, qi, 0)),
        ),
        compiler_params=pltpu.CompilerParams(
            dimension_semantics=("parallel", "parallel"),
            vmem_limit_bytes=vmem_limit),
        cost_estimate=pl.CostEstimate(
            flops=flops, transcendentals=transcendentals,
            bytes_accessed=bytes_accessed),
    )(*args)


# ----------------------------------------------------------------------------
# Pure-JAX reference (mirrors the kernel's bf16-operand / f32-accumulate math)
# ----------------------------------------------------------------------------
def encoder_layer_ref(x, params, num_heads):
    bf16, f32 = jnp.bfloat16, jnp.float32
    B, S, D = x.shape
    dh = D // num_heads

    def mm(a, ww):
        return jnp.dot(a.astype(bf16), ww.astype(bf16), preferred_element_type=f32)

    def ln(v, g, b):
        mu = v.mean(-1, keepdims=True)
        var = ((v - mu) ** 2).mean(-1, keepdims=True)
        return (v - mu) / jnp.sqrt(var + EPS) * g[0] + b[0]

    q = mm(x, params["wq"]) + params["bq"][0]
    k = mm(x, params["wk"]) + params["bk"][0]
    v = mm(x, params["wv"]) + params["bv"][0]

    def split(t):
        return t.reshape(B, S, num_heads, dh).transpose(0, 2, 1, 3)

    qh, kh, vh = split(q), split(k), split(v)
    s = jnp.einsum("bhqd,bhkd->bhqk", qh.astype(bf16), kh.astype(bf16),
                   preferred_element_type=f32) / jnp.sqrt(float(dh))
    p = jax.nn.softmax(s, axis=-1)
    ctx = jnp.einsum("bhqk,bhkd->bhqd", p.astype(bf16), vh.astype(bf16),
                     preferred_element_type=f32)
    ctx = ctx.transpose(0, 2, 1, 3).reshape(B, S, D)
    attn = mm(ctx, params["wo"]) + params["bo"][0]
    out1 = ln(x + attn, params["ln1_g"], params["ln1_b"])
    h1 = jnp.maximum(mm(out1, params["w1"]) + params["b1"][0], 0.0)
    ff = mm(h1, params["w2"]) + params["b2"][0]
    return ln(out1 + ff, params["ln2_g"], params["ln2_b"])


# ----------------------------------------------------------------------------
# Deterministic parameter init (PyTorch-style uniform(-1/sqrt(fan_in), ...))
# ----------------------------------------------------------------------------
def init_params(key, embed_dim, ff_dim):
    params = {}
    names = [("wq", embed_dim, embed_dim), ("wk", embed_dim, embed_dim),
             ("wv", embed_dim, embed_dim), ("wo", embed_dim, embed_dim),
             ("w1", embed_dim, ff_dim), ("w2", ff_dim, embed_dim)]
    keys = jax.random.split(key, 2 * len(names))
    for i, (name, fan_in, fan_out) in enumerate(names):
        bound = 1.0 / (fan_in ** 0.5)
        params[name] = jax.random.uniform(
            keys[2 * i], (fan_in, fan_out), jnp.float32, -bound, bound)
        params["b" + name[1:]] = jax.random.uniform(
            keys[2 * i + 1], (1, fan_out), jnp.float32, -bound, bound)
    params["ln1_g"] = jnp.ones((1, embed_dim), jnp.float32)
    params["ln1_b"] = jnp.zeros((1, embed_dim), jnp.float32)
    params["ln2_g"] = jnp.ones((1, embed_dim), jnp.float32)
    params["ln2_b"] = jnp.zeros((1, embed_dim), jnp.float32)
    return params


if __name__ == "__main__":
    # lane-aligned small shapes: last dim multiple of 128, seq multiple of the
    # 256-wide tiles so both grid axes (B, qi) = (2, 2) are exercised.
    B, S, D, H, FF = 2, 512, 128, 4, 256

    key = jax.random.PRNGKey(0)
    kx, kp = jax.random.split(key)
    x = jax.random.normal(kx, (B, S, D), jnp.float32)
    params = init_params(kp, D, FF)

    # TODO(synk): attention mask (forward uses mask=None) and stochastic
    # dropout (eval-mode identity here) are not implemented.
    # TODO(synk): for S >= ~2048 replace the full-row softmax with an online-
    # softmax loop over KV tiles.
    out = encoder_layer(x, params, num_heads=H)
    out = jax.block_until_ready(out)

    ref = encoder_layer_ref(x, params, num_heads=H)
    assert out.shape == (B, S, D)
    max_diff = jnp.max(jnp.abs(out - ref))
    assert jnp.allclose(out, ref, atol=2e-2, rtol=2e-2), f"max diff {max_diff}"

    print("KERNEL_OK")
</pallas_src>

<mosaic_0001>
module attributes {stable_mosaic.version = 11 : i64} {
  func.func @qkv_projection_kernel(%arg0: i32, %arg1: i32, %arg2: memref<1x256x128xf32, #tpu.memory_space<vmem>>, %arg3: memref<128x128xbf16, #tpu.memory_space<vmem>>, %arg4: memref<1x128xf32, #tpu.memory_space<vmem>>, %arg5: memref<128x128xbf16, #tpu.memory_space<vmem>>, %arg6: memref<1x128xf32, #tpu.memory_space<vmem>>, %arg7: memref<128x128xbf16, #tpu.memory_space<vmem>>, %arg8: memref<1x128xf32, #tpu.memory_space<vmem>>, %arg9: memref<1x256x128xbf16, #tpu.memory_space<vmem>>, %arg10: memref<1x256x128xbf16, #tpu.memory_space<vmem>>, %arg11: memref<1x256x128xbf16, #tpu.memory_space<vmem>>) attributes {dimension_semantics = [#tpu.dimension_semantics<parallel>, #tpu.dimension_semantics<parallel>], iteration_bounds = array<i64: 2, 2>, scalar_prefetch = 0 : i64, scratch_operands = 0 : i64, tpu.core_type = #tpu.core_type<tc>, window_params = [{transform_indices = @transform_0, window_bounds = array<i64: 1, 256, 128>}, {pipeline_mode = #tpu.pipeline_mode<synchronous>, transform_indices = @transform_1, window_bounds = array<i64: 128, 128>}, {pipeline_mode = #tpu.pipeline_mode<synchronous>, transform_indices = @transform_2, window_bounds = array<i64: 1, 128>}, {pipeline_mode = #tpu.pipeline_mode<synchronous>, transform_indices = @transform_3, window_bounds = array<i64: 128, 128>}, {pipeline_mode = #tpu.pipeline_mode<synchronous>, transform_indices = @transform_4, window_bounds = array<i64: 1, 128>}, {pipeline_mode = #tpu.pipeline_mode<synchronous>, transform_indices = @transform_5, window_bounds = array<i64: 128, 128>}, {pipeline_mode = #tpu.pipeline_mode<synchronous>, transform_indices = @transform_6, window_bounds = array<i64: 1, 128>}, {transform_indices = @transform_7, window_bounds = array<i64: 1, 256, 128>}, {transform_indices = @transform_8, window_bounds = array<i64: 1, 256, 128>}, {transform_indices = @transform_9, window_bounds = array<i64: 1, 256, 128>}]} {
    %c0 = arith.constant 0 : index
    %c0_0 = arith.constant 0 : index
    %c0_1 = arith.constant 0 : index
    %0 = vector.load %arg2[%c0, %c0_0, %c0_1] : memref<1x256x128xf32, #tpu.memory_space<vmem>>, vector<1x256x128xf32>
    %1 = vector.shape_cast %0 : vector<1x256x128xf32> to vector<256x128xf32>
    %2 = arith.truncf %1 : vector<256x128xf32> to vector<256x128xbf16>
    %c0_2 = arith.constant 0 : index
    %c0_3 = arith.constant 0 : index
    %3 = vector.load %arg3[%c0_2, %c0_3] : memref<128x128xbf16, #tpu.memory_space<vmem>>, vector<128x128xbf16>
    %cst = arith.constant dense<0.000000e+00> : vector<256x128xf32>
    %4 = tpu.matmul %2, %3, %cst {dimension_numbers = #tpu.dot_dimension_numbers<[1], [0], [0], [1], [0, 0, 1, 1], [], []>} : vector<256x128xbf16>, vector<128x128xbf16>, vector<256x128xf32> -> vector<256x128xf32>
    %c0_4 = arith.constant 0 : index
    %c0_5 = arith.constant 0 : index
    %5 = vector.load %arg4[%c0_4, %c0_5] : memref<1x128xf32, #tpu.memory_space<vmem>>, vector<1x128xf32>
    %6 = vector.broadcast %5 : vector<1x128xf32> to vector<256x128xf32>
    %7 = arith.addf %4, %6 : vector<256x128xf32>
    %8 = arith.truncf %7 : vector<256x128xf32> to vector<256x128xbf16>
    %c0_6 = arith.constant 0 : index
    %c0_7 = arith.constant 0 : index
    %c0_8 = arith.constant 0 : index
    %9 = vector.load %arg9[%c0_6, %c0_7, %c0_8] : memref<1x256x128xbf16, #tpu.memory_space<vmem>>, vector<1x256x128xbf16>
    %10 = vector.shape_cast %9 : vector<1x256x128xbf16> to vector<256x128xbf16>
    %11 = vector.shape_cast %8 : vector<256x128xbf16> to vector<1x256x128xbf16>
    tpu.vector_store %arg9[%c0_6, %c0_7, %c0_8], %11 {strides = array<i32>} : memref<1x256x128xbf16, #tpu.memory_space<vmem>>, vector<1x256x128xbf16>,
    %c0_9 = arith.constant 0 : index
    %c0_10 = arith.constant 0 : index
    %12 = vector.load %arg5[%c0_9, %c0_10] : memref<128x128xbf16, #tpu.memory_space<vmem>>, vector<128x128xbf16>
    %cst_11 = arith.constant dense<0.000000e+00> : vector<256x128xf32>
    %13 = tpu.matmul %2, %12, %cst_11 {dimension_numbers = #tpu.dot_dimension_numbers<[1], [0], [0], [1], [0, 0, 1, 1], [], []>} : vector<256x128xbf16>, vector<128x128xbf16>, vector<256x128xf32> -> vector<256x128xf32>
    %c0_12 = arith.constant 0 : index
    %c0_13 = arith.constant 0 : index
    %14 = vector.load %arg6[%c0_12, %c0_13] : memref<1x128xf32, #tpu.memory_space<vmem>>, vector<1x128xf32>
    %15 = vector.broadcast %14 : vector<1x128xf32> to vector<256x128xf32>
    %16 = arith.addf %13, %15 : vector<256x128xf32>
    %17 = arith.truncf %16 : vector<256x128xf32> to vector<256x128xbf16>
    %c0_14 = arith.constant 0 : index
    %c0_15 = arith.constant 0 : index
    %c0_16 = arith.constant 0 : index
    %18 = vector.load %arg10[%c0_14, %c0_15, %c0_16] : memref<1x256x128xbf16, #tpu.memory_space<vmem>>, vector<1x256x128xbf16>
    %19 = vector.shape_cast %18 : vector<1x256x128xbf16> to vector<256x128xbf16>
    %20 = vector.shape_cast %17 : vector<256x128xbf16> to vector<1x256x128xbf16>
    tpu.vector_store %arg10[%c0_14, %c0_15, %c0_16], %20 {strides = array<i32>} : memref<1x256x128xbf16, #tpu.memory_space<vmem>>, vector<1x256x128xbf16>,
    %c0_17 = arith.constant 0 : index
    %c0_18 = arith.constant 0 : index
    %21 = vector.load %arg7[%c0_17, %c0_18] : memref<128x128xbf16, #tpu.memory_space<vmem>>, vector<128x128xbf16>
    %cst_19 = arith.constant dense<0.000000e+00> : vector<256x128xf32>
    %22 = tpu.matmul %2, %21, %cst_19 {dimension_numbers = #tpu.dot_dimension_numbers<[1], [0], [0], [1], [0, 0, 1, 1], [], []>} : vector<256x128xbf16>, vector<128x128xbf16>, vector<256x128xf32> -> vector<256x128xf32>
    %c0_20 = arith.constant 0 : index
    %c0_21 = arith.constant 0 : index
    %23 = vector.load %arg8[%c0_20, %c0_21] : memref<1x128xf32, #tpu.memory_space<vmem>>, vector<1x128xf32>
    %24 = vector.broadcast %23 : vector<1x128xf32> to vector<256x128xf32>
    %25 = arith.addf %22, %24 : vector<256x128xf32>
    %26 = arith.truncf %25 : vector<256x128xf32> to vector<256x128xbf16>
    %c0_22 = arith.constant 0 : index
    %c0_23 = arith.constant 0 : index
    %c0_24 = arith.constant 0 : index
    %27 = vector.load %arg11[%c0_22, %c0_23, %c0_24] : memref<1x256x128xbf16, #tpu.memory_space<vmem>>, vector<1x256x128xbf16>
    %28 = vector.shape_cast %27 : vector<1x256x128xbf16> to vector<256x128xbf16>
    %29 = vector.shape_cast %26 : vector<256x128xbf16> to vector<1x256x128xbf16>
    tpu.vector_store %arg11[%c0_22, %c0_23, %c0_24], %29 {strides = array<i32>} : memref<1x256x128xbf16, #tpu.memory_space<vmem>>, vector<1x256x128xbf16>,
    return
  }
  func.func @transform_0(%arg0: i32, %arg1: i32) -> (i32, i32, i32) {
    %c0_i32 = arith.constant 0 : i32
    %c0_i32_0 = arith.constant 0 : i32
    return %arg0, %arg1, %c0_i32 : i32, i32, i32
  }
  func.func @transform_1(%arg0: i32, %arg1: i32) -> (i32, i32) {
    %c0_i32 = arith.constant 0 : i32
    %c0_i32_0 = arith.constant 0 : i32
    %c0_i32_1 = arith.constant 0 : i32
    return %c0_i32, %c0_i32_0 : i32, i32
  }
  func.func @transform_2(%arg0: i32, %arg1: i32) -> (i32, i32) {
    %c0_i32 = arith.constant 0 : i32
    %c0_i32_0 = arith.constant 0 : i32
    %c0_i32_1 = arith.constant 0 : i32
    return %c0_i32, %c0_i32_0 : i32, i32
  }
  func.func @transform_3(%arg0: i32, %arg1: i32) -> (i32, i32) {
    %c0_i32 = arith.constant 0 : i32
    %c0_i32_0 = arith.constant 0 : i32
    %c0_i32_1 = arith.constant 0 : i32
    return %c0_i32, %c0_i32_0 : i32, i32
  }
  func.func @transform_4(%arg0: i32, %arg1: i32) -> (i32, i32) {
    %c0_i32 = arith.constant 0 : i32
    %c0_i32_0 = arith.constant 0 : i32
    %c0_i32_1 = arith.constant 0 : i32
    return %c0_i32, %c0_i32_0 : i32, i32
  }
  func.func @transform_5(%arg0: i32, %arg1: i32) -> (i32, i32) {
    %c0_i32 = arith.constant 0 : i32
    %c0_i32_0 = arith.constant 0 : i32
    %c0_i32_1 = arith.constant 0 : i32
    return %c0_i32, %c0_i32_0 : i32, i32
  }
  func.func @transform_6(%arg0: i32, %arg1: i32) -> (i32, i32) {
    %c0_i32 = arith.constant 0 : i32
    %c0_i32_0 = arith.constant 0 : i32
    %c0_i32_1 = arith.constant 0 : i32
    return %c0_i32, %c0_i32_0 : i32, i32
  }
  func.func @transform_7(%arg0: i32, %arg1: i32) -> (i32, i32, i32) {
    %c0_i32 = arith.constant 0 : i32
    %c0_i32_0 = arith.constant 0 : i32
    return %arg0, %arg1, %c0_i32 : i32, i32, i32
  }
  func.func @transform_8(%arg0: i32, %arg1: i32) -> (i32, i32, i32) {
    %c0_i32 = arith.constant 0 : i32
    %c0_i32_0 = arith.constant 0 : i32
    return %arg0, %arg1, %c0_i32 : i32, i32, i32
  }
  func.func @transform_9(%arg0: i32, %arg1: i32) -> (i32, i32, i32) {
    %c0_i32 = arith.constant 0 : i32
    %c0_i32_0 = arith.constant 0 : i32
    return %arg0, %arg1, %c0_i32 : i32, i32, i32
  }
}

</mosaic_0001>

<bundles_post_ra>
// kernel: tpu_custom_call.1
= control target key start
LH: loop header
LB: loop body
LE: loop exit
PB: predicated region body
PF: predicated region fallthrough
CT: control target
= control target key end

     0   :  { %s3725_s0 = inlined_call_operand.hbm [shape: f32[2,512,128], index: 0, kind: input, shape index: {}]   ;;  %s3726_s1 = inlined_call_operand.hbm [shape: bf16[128,128], index: 1, kind: input, shape index: {}]   ;;  %s3727_s2 = inlined_call_operand.vmem [shape: f32[1,128], index: 2, kind: input, shape index: {}]   ;;  %s3728_s3 = inlined_call_operand.hbm [shape: bf16[128,128], index: 3, kind: input, shape index: {}]   ;;  %s3729_s4 = inlined_call_operand.vmem [shape: f32[1,128], index: 4, kind: input, shape index: {}]   ;;  %s3730_s5 = inlined_call_operand.hbm [shape: bf16[128,128], index: 5, kind: input, shape index: {}]   ;;  %s3731_s6 = inlined_call_operand.vmem [shape: f32[1,128], index: 6, kind: input, shape index: {}]   ;;  %s3732_s7 = inlined_call_operand.hbm [shape: bf16[2,512,128], index: 7, kind: output, shape index: {0}]   ;;  %s3733_s8 = inlined_call_operand.hbm [shape: bf16[2,512,128], index: 8, kind: output, shape index: {1}]   ;;  %s3734_s9 = inlined_call_operand.hbm [shape: bf16[2,512,128], index: 9, kind: output, shape index: {2}]  }
   0x1   :  { %3744 = sst [smem:[#allocation23_spill]] %s3726_s1 }
   0x2   :  { %3745 = sst [smem:[#allocation24_spill]] %s3728_s3 }
   0x3   :  { %3746 = sst [smem:[#allocation25_spill]] %s3729_s4 }
   0x4   :  { %3747 = sst [smem:[#allocation26_spill]] %s3730_s5 }
   0x5   :  { %3748 = sst [smem:[#allocation27_spill]] %s3731_s6 }
   0x6   :  { %3749 = sst [smem:[#allocation28_spill]] %s3733_s8 }
   0x7   :  { %3750 = sst [smem:[#allocation29_spill]] %s3734_s9 }
   0x8   :  { %15 = vsyncpa [#allocation3], 0 }
   0x9   :  { %17 = vsyncpa [#allocation3 + $0x1], 0 }
   0xa   :  { %18 = vsyncpa [#allocation6], 0 }
   0xb   :  { %19 = vsyncpa [#allocation9], 0 }
   0xc   :  { %20 = vsyncpa [#allocation4], 0 }
   0xd   :  { %22 = vsyncpa [#allocation4 + $0x1], 0 }
   0xe   :  { %23 = vsyncpa [#allocation12], 0 }
   0xf   :  { %25 = vsyncpa [#allocation12 + $0x1], 0  ;;  %s3161_s30 = smov 0   ;;  %s3163_s10 = smov 0  }
  0x10   :  { %s3165_s11 = smov 0   ;;  %s3167_s12 = smov 0  }
  0x11   :  { %s3169_s13 = smov 0   ;;  %s3171_s14 = smov 0  }
  0x12   :  { %s3173_s15 = smov 0   ;;  %s3175_s16 = smov 0  }
  0x13 LB: > { %3751 = sst [smem:[#allocation19_spill]] %s3068_s30  ;;  %s3202_s17 = sadd.s32 4294967295, %s3096_s16   ;;  %s3096_s16 = sphi %s3175_s16, %s31_s16   ;;  %s3092_s15 = sphi %s3173_s15, %s3786_s15   ;;  %s3088_s14 = sphi %s3171_s14, %s3781_s14   ;;  %s3084_s13 = sphi %s3169_s13, %s3785_s13   ;;  %s3080_s12 = sphi %s3167_s12, %s3780_s12   ;;  %s3076_s11 = sphi %s3165_s11, %s3784_s11   ;;  %s3072_s10 = sphi %s3163_s10, %s3783_s10   ;;  %s3068_s30 = sphi %s3161_s30, %s3782_s30  }
  0x14   : > { %3752 = sst [smem:[#allocation20_spill]] %s3088_s14  ;;  %s3735_s18 = sadd.s32 4294967294, %s3096_s16  }
  0x15   : > { %p65_p0 = scmp.ne.s32.totalorder %s3072_s10, %s3068_s30  ;;  %p3737_p1 = scmp.eq.s32.totalorder %s3202_s17, 0 }
  0x16   : > { %p223_p3 = scmp.eq.s32.totalorder %s3735_s18, 3  ;;  %p1914_p5 = scmp.ge.s32.totalorder %s3096_s16, 1 }
  0x17   : > { %p3213_p4 = por %p3737_p1, %p65_p0  ;;  %p286_p7 = scmp.lt.s32.totalorder %s3096_s16, 5 }
  0x18   : > { %p3218_p6 = por %p223_p3, %p65_p0  ;;  %s3098_s22 = smov [#allocation5]  }
  0x19   : > { %s3753_s19 = scalar_select %p3213_p4, 1, 0 }
  0x1a   : > { %s3754_s20 = scalar_select %p3218_p6, 1, 0 }
  0x1b   : > { %p3223_p8 = pnand %p1914_p5, %p286_p7  ;;  %s298_s23 = sshll.u32 %s3098_s22, 4  ;;  %s299_s23 = int_to_ptr.vmem [resolvable:$true] %s298_s23 }
  0x1c   : > { %3755 = sst [smem:[#allocation21_spill]] %s3754_s20  ;;  %s3099_s25 = smov [#allocation7]  }
  0x1d   : > { %p2701_p9 = pneg %p3223_p8  ;;  %s314_s26 = sshll.u32 %s3099_s25, 4  ;;  %s315_s26 = int_to_ptr.vmem [resolvable:$true] %s314_s26 }
  0x1e   : > { %s3100_s27 = smov [#allocation8]   ;;  %s2841_s29 = scalar_lea.vmem %s299_s23, 1024 }
  0x1f   : > { %p3231_p10 = pnand %p2701_p9, %p3737_p1  ;;  %s330_s28 = sshll.u32 %s3100_s27, 4  ;;  %s331_s28 = int_to_ptr.vmem [resolvable:$true] %s330_s28 }
  0x20   : > { %p2842_p12 = scmp.ne.s32.totalorder %s299_s23, %s2841_s29  ;;  %p2849_p3 = scmp.lt.s32.totalorder %s299_s23, %s299_s23 }
  0x21   : > { %p2832_p11 = pneg %p3231_p10  ;;  %p2850_p5 = scmp.lt.s32.totalorder %s2841_s29, %s2841_s29 }
  0x23   : > { %p2844_p13 = pnand %p2842_p12, %p2832_p11  ;;  %p2851_p7 = por %p2850_p5, %p2849_p3 }
  0x25   : > { %p2845_p0 = pneg %p2844_p13 }
  0x27   : > { %p2852_p9 = pnand %p2851_p7, %p2845_p0 }
  0x29   : > { %2855 = shalt.err (!%p2852_p9)
}
  0x2a   : > { %s3101_s22 = smov 64   ;;  %s3102_s25 = smov 4  }
  0x2b   : > { %s3758_s1 = sld [smem:[#allocation23_spill]]  ;;  %s2867_s20 = scalar_lea.vmem %s315_s26, 1024 }
  0x2c   : > { %p2868_p1 = scmp.ne.s32.totalorder %s315_s26, %s2867_s20  ;;  %p2875_p2 = scmp.lt.s32.totalorder %s315_s26, %s315_s26 }
  0x2d   : > { %p2876_p6 = scmp.lt.s32.totalorder %s2867_s20, %s2867_s20 }
  0x2e   : > { %p2870_p12 = pnand %p2868_p1, %p2832_p11 }
  0x2f   : > { %p2877_p3 = por %p2876_p6, %p2875_p2 }
  0x30   : > { %p2871_p13 = pneg %p2870_p12 }
  0x31   : > { %2704 = dma.hbm_to_vmem [thread:$0]  (!%p3231_p10), %s3758_s1, 1024, %s299_s23, [#allocation6], %s3101_s22, %s3101_s22, %s3102_s25  }
  0x32   : > { %p2878_p0 = pnand %p2877_p3, %p2871_p13 }
  0x34   : > { %2881 = shalt.err (!%p2878_p0)
}
  0x35   : > { %s3759_s3 = sld [smem:[#allocation24_spill]]  ;;  %s2893_s18 = scalar_lea.vmem %s331_s28, 1024 }
  0x36   : > { %p2894_p5 = scmp.ne.s32.totalorder %s331_s28, %s2893_s18  ;;  %p2901_p9 = scmp.lt.s32.totalorder %s331_s28, %s331_s28 }
  0x37   : > { %p2902_p12 = scmp.lt.s32.totalorder %s2893_s18, %s2893_s18 }
  0x38   : > { %p2896_p7 = pnand %p2894_p5, %p2832_p11 }
  0x39   : > { %p2903_p4 = por %p2902_p12, %p2901_p9 }
  0x3a   : > { %p2897_p1 = pneg %p2896_p7 }
  0x3b   : > { %2707 = dma.hbm_to_vmem [thread:$0]  (!%p3231_p10), %s3759_s3, 1024, %s315_s26, [#allocation6], %s3101_s22, %s3101_s22, %s3102_s25  }
  0x3c   : > { %p2904_p2 = pnand %p2903_p4, %p2897_p1 }
  0x3e   : > { %2907 = shalt.err (!%p2904_p2)
}
  0x3f   : > { %s3760_s5 = sld [smem:[#allocation26_spill]]  ;;  %s40_s30 = sadd.s32 1, %s3088_s14 }
  0x40   : > { %p41_p4 = scmp.ge.s32.totalorder %s40_s30, 2  ;;  %s43_s24 = sadd.s32 1, %s3092_s15 }
  0x41   : > { %s52_s26 = sadd.s32 1, %s3076_s11  ;;  %p59_p6 = scmp.ne.s32.totalorder %s3076_s11, %s3072_s10 }
  0x42   : > { %s3788_s30 = smov (%p41_p4, %s40_s30), 0  ;;  %s3790_s24 = smov (!%p41_p4, %s43_s24), %s3092_s15 }
  0x43   : > { %3761 = sst [smem:[#allocation22_spill]] %s3788_s30  ;;  %s48_s27 = ssub.s32 %s3088_s14, %s3788_s30 }
  0x44   : > { %p60_p11 = scmp.eq.s32.totalorder %s3096_s16, 0  ;;  %p45_p13 = scmp.ge.s32.totalorder %s3790_s24, 2 }
  0x45   : > { %2710 = dma.hbm_to_vmem [thread:$0]  (!%p3231_p10), %s3760_s5, 1024, %s331_s28, [#allocation9], %s3101_s22, %s3101_s22, %s3102_s25  }
  0x46   : > { %p3762_p3 = scmp.eq.s32.totalorder %s3202_s17, 3  ;;  %p3278_p10 = por %p60_p11, %p59_p6 }
  0x47   : > { %p2728_p5 = scmp.lt.s32.totalorder %s3096_s16, 4  ;;  %s3792_s24 = smov (%p45_p13, %s3790_s24), 0 }
  0x48   : > { %p3274_p0 = por %p3762_p3, %p59_p6  ;;  %s347_s22 = sand.u32 1, %s3076_s11  }
  0x49   : > { %s1920_s25 = sshll.u32 %s3088_s14, 5  ;;  %s47_s18 = ssub.s32 %s3092_s15, %s3792_s24 }
  0x4a   : > { %s49_s20 = sor.u32 %s48_s27, %s47_s18  ;;  %s1919_s23 = sshll.u32 %s347_s22, 8 }
  0x4b   : > { %p50_p7 = scmp.eq.s32.totalorder %s49_s20, 0  ;;  %s1921_s1 = sshll.u32 %s3092_s15, 6 }
  0x4c   : > { %s351_s3 = scalar_lea.vmem [#allocation2], %s1919_s23  ;;  %s357_s9 = sadd.s32 %s1921_s1, %s1920_s25 }
  0x4d   : > { %s360_s5 = sshll.u32 %s351_s3, 4  ;;  %s1922_s8 = sshll.u32 %s357_s9, 7  ;;  %s361_s5 = int_to_ptr.vmem [resolvable:$true] %s360_s5 }
  0x4e   : > { %s3291_s30 = scalar_select %p50_p7, %s3076_s11, %s52_s26  }
  0x4f   : > { %p3297_p1 = pnand %p2728_p5, %p3278_p10  ;;  %s359_s27 = scalar_lea.hbm %s3725_s0, %s1922_s8 }
  0x50   : > { %s348_s18 = scalar_lea.sflag [#allocation3], %s347_s22  ;;  %s2921_s3 = scalar_lea.vmem %s361_s5, 4096 }
  0x51   : > { %p2910_p9 = pneg %p3297_p1  ;;  %p2922_p12 = scmp.ne.s32.totalorder %s361_s5, %s2921_s3 }
  0x52   : > { %s3103_s1 = smov [#allocation2]  }
  0x53   : > { %p2924_p2 = pnand %p2922_p12, %p2910_p9  ;;  %s2926_s9 = sshll.u32 %s3103_s1, 4  ;;  %s2927_s9 = int_to_ptr.vmem [resolvable:$false] %s2926_s9 }
  0x54   : > { %s2928_s26 = scalar_lea.vmem %s2927_s9, 8192  ;;  %p2929_p6 = scmp.lt.s32.totalorder %s361_s5, %s2927_s9 }
  0x55   : > { %p2925_p4 = pneg %p2924_p2  ;;  %p2930_p11 = scmp.lt.s32.totalorder %s2928_s26, %s2921_s3 }
  0x57   : > { %p2931_p13 = por %p2930_p11, %p2929_p6 }
  0x59   : > { %p2932_p3 = pnand %p2931_p13, %p2925_p4 }
  0x5b   : > { %2935 = shalt.err (!%p2932_p3)
}
  0x5c   : > { %s3104_s28 = smov 128   ;;  %s3105_s4 = smov 8  }
  0x5d   : > { %2714 = dma.hbm_to_vmem [thread:$0]  (!%p3297_p1), %s359_s27, 4096, %s361_s5, %s348_s18, %s3104_s28, %s3104_s28, %s3105_s4  }
  0x5e   : > { %372 = sbr.rel (%p3223_p8) target bundleno = 474 (0x1da), region = 48  ;;  %s3311_s8 = sand.u32 (!%p3223_p8), 1, %s3072_s10  }
  0x5f   : > { %s1924_s14 = sshll.u32 (!%p3223_p8), %s3311_s8, 8  ;;  %s375_s22 = scalar_lea.sflag (!%p3223_p8), [#allocation3], %s3311_s8 }
  0x60   : > { %s3315_s25 = scalar_lea.vmem (!%p3223_p8), [#allocation2], %s1924_s14  ;;  %p3766_p10 = scmp.ne.s32.totalorder (!%p3223_p8), %s3753_s19, 0 }
  0x63   : > { %3047 = dma.done.wait (%p3766_p10), %s375_s22, 4096  }
  0x64   : > { %3049 = vsyncadd (%p3766_p10), %s375_s22, 4294963200  ;;  %p3767_p5 = scmp.eq.s32.totalorder %s3202_s17, 0 }
  0x66   : > { %3051 = dma.done.wait (%p3767_p5), [#allocation6], 2048   ;;  %p3768_p8 = pmov %p3767_p5 }
  0x67   : > { %p3769_p7 = pmov %p3767_p5 }
  0x68   : > { %3053 = vsyncadd (%p3768_p8), [#allocation6], 4294965248 }
  0x69   : > { %3055 = dma.done.wait (%p3769_p7), [#allocation9], 1024   ;;  %p3770_p1 = pmov %p3767_p5 }
  0x6a   : > { %v2806_v0 = vld [vmem:[#allocation5 + $0x38] sm:$0xff]   ;;  %v2807_v1 = vld [vmem:[#allocation5 + $0x30] sm:$0xff]   ;;  %v2808_v2 = vld [vmem:[#allocation5 + $0x28] sm:$0xff]   ;;  %s3422_s19 = sshll.u32 %s3311_s8, 7  ;;  %s2057_s20 = sshll.u32 %s3080_s12, 5 }
  0x6b   : > { %3057 = vsyncadd (%p3770_p1), [#allocation9], 4294966272  ;;  %2521 = vmatprep.subr.bf16.mxu0 %v2806_v0  ;;  %2665 = vmatprep.subr.bf16.mxu1 %v2806_v0  ;;  %v2809_v3 = vld [vmem:[#allocation5 + $0x20] sm:$0xff]   ;;  %v441_v5 = vld [vmem:[%s3315_s25 + $0x8] sm:$0xff]  ;;  %s3433_s21 = scalar_lea.vmem [#allocation10], %s3422_s19  ;;  %s2058_s23 = sshll.u32 %s3084_s13, 6 }
  0x6c   : > { %2522 = vmatpush3.bf16.msra.mxu0 %v2806_v0  ;;  %2673 = vmatpush3.bf16.msra.mxu1 %v2806_v0  ;;  %v440_v4 = vld [vmem:[%s3315_s25] sm:$0xff]  ;;  %v457_v8 = vld [vmem:[%s3315_s25 + $0x88] sm:$0xff]  ;;  %v2810_v10 = vld [vmem:[#allocation5 + $0x18] sm:$0xff]   ;;  %s1687_s27 = sadd.s32 %s2058_s23, %s2057_s20  ;;  %s1690_s13 = sshll.u32 %s3433_s21, 4  ;;  %s3484_s13 = int_to_ptr.vmem [resolvable:$true] %s1690_s13 }
  0x6d   : > { %2523 = vmatprep.subr.bf16.mxu0 %v2807_v1  ;;  %2666 = vmatprep.subr.bf16.mxu1 %v2807_v1  ;;  %v456_v6 = vld [vmem:[%s3315_s25 + $0x80] sm:$0xff]  ;;  %v3332_v7 = vpack.c.bf16 %v441_v5, %v440_v4  ;;  %v2811_v11 = vld [vmem:[#allocation5 + $0x10] sm:$0xff]   ;;  %v2812_v12 = vld [vmem:[#allocation5 + $0x8] sm:$0xff]   ;;  %s3471_s12 = sshll.u32 %s1687_s27, 6  ;;  %s3771_s28 = sld [smem:[#allocation25_spill]] }
  0x6e   : > { %v3335_v9 = vpack.c.bf16 %v457_v8, %v456_v6  ;;  %v2813_v13 = vld [vmem:[#allocation5] sm:$0xff]   ;;  %v442_v14 = vld [vmem:[%s3315_s25 + $0x10] sm:$0xff]  ;;  %v443_v15 = vld [vmem:[%s3315_s25 + $0x18] sm:$0xff]  ;;  %s3482_s1 = scalar_lea.hbm %s3732_s7, %s3471_s12  ;;  %s3772_s22 = sld [smem:[#allocation27_spill]] }
  0x6f   : > { %2537 = vmatprep.mubr.bf16.mxu0 %v3332_v7  ;;  %v458_v16 = vld [vmem:[%s3315_s25 + $0x90] sm:$0xff]  ;;  %v459_v17 = vld [vmem:[%s3315_s25 + $0x98] sm:$0xff]  ;;  %v444_v20 = vld [vmem:[%s3315_s25 + $0x20] sm:$0xff]  ;;  %v3345_v22 = vpack.c.bf16 %v443_v15, %v442_v14  ;;  %s2936_s5 = scalar_lea.vmem %s3484_s13, 2048  ;;  %s3106_s6 = smov [#allocation10]  }
  0x70   : > { %2524 = vmatpush3.bf16.msra.mxu0 %v2807_v1  ;;  %2674 = vmatpush3.bf16.msra.mxu1 %v2807_v1  ;;  %v2814_v18 = vld [vmem:[#allocation7 + $0x38] sm:$0xff]   ;;  %v445_v21 = vld [vmem:[%s3315_s25 + $0x28] sm:$0xff]  ;;  %v3347_v23 = vpack.c.bf16 %v459_v17, %v458_v16  ;;  %v460_v24 = vld [vmem:[%s3315_s25 + $0xa0] sm:$0xff]  ;;  %p2937_p9 = scmp.ne.s32.totalorder %s3484_s13, %s2936_s5  ;;  %s2940_s20 = sshll.u32 %s3106_s6, 4  ;;  %s2941_s20 = int_to_ptr.vmem [resolvable:$false] %s2940_s20 }
  0x71   : > { %2525 = vmatprep.subr.bf16.mxu0 %v2808_v2  ;;  %2667 = vmatprep.subr.bf16.mxu1 %v2808_v2  ;;  %v2815_v19 = vld [vmem:[#allocation8 + $0x38] sm:$0xff]   ;;  %v461_v25 = vld [vmem:[%s3315_s25 + $0xa8] sm:$0xff]  ;;  %v2816_v26 = vld [vmem:[#allocation7 + $0x30] sm:$0xff]   ;;  %v3351_v28 = vpack.c.bf16 %v445_v21, %v444_v20  ;;  %s2942_s23 = scalar_lea.vmem %s2941_s20, 4096  ;;  %p2943_p4 = scmp.lt.s32.totalorder %s3484_s13, %s2941_s20 }
  0x72   : > { %2553 = vmatprep.mubr.bf16.mxu1 %v3335_v9  ;;  %v2817_v27 = vld [vmem:[#allocation8 + $0x30] sm:$0xff]   ;;  %v3353_v29 = vpack.c.bf16 %v461_v25, %v460_v24  ;;  %v447_v31 = vld [vmem:[%s3315_s25 + $0x38] sm:$0xff]  ;;  %v2818_v34 = vld [vmem:[#allocation7 + $0x28] sm:$0xff]   ;;  %p2938_p12 = pnand %p2937_p9, %p3274_p0  ;;  %p2944_p6 = scmp.lt.s32.totalorder %s2942_s23, %s2936_s5 }
  0x73   : > { %v446_v30 = vld [vmem:[%s3315_s25 + $0x30] sm:$0xff]  ;;  %v463_v33 = vld [vmem:[%s3315_s25 + $0xb8] sm:$0xff]  ;;  %v2819_v35 = vld [vmem:[#allocation8 + $0x28] sm:$0xff]  }
  0x74   : > { %2526 = vmatpush3.bf16.msra.mxu0 %v2808_v2  ;;  %2675 = vmatpush3.bf16.msra.mxu1 %v2808_v2  ;;  %v462_v32 = vld [vmem:[%s3315_s25 + $0xb0] sm:$0xff]  ;;  %v448_v36 = vld [vmem:[%s3315_s25 + $0x40] sm:$0xff]  ;;  %v3364_v37 = vpack.c.bf16 %v447_v31, %v446_v30  ;;  %v449_v39 = vld [vmem:[%s3315_s25 + $0x48] sm:$0xff]  ;;  %p2939_p2 = pneg %p2938_p12  ;;  %p2945_p11 = por %p2944_p6, %p2943_p4 }
  0x75   : > { %2527 = vmatprep.subr.bf16.mxu0 %v2809_v3  ;;  %2668 = vmatprep.subr.bf16.mxu1 %v2809_v3  ;;  %v3366_v38 = vpack.c.bf16 %v463_v33, %v462_v32  ;;  %v464_v40 = vld [vmem:[%s3315_s25 + $0xc0] sm:$0xff]  ;;  %v465_v41 = vld [vmem:[%s3315_s25 + $0xc8] sm:$0xff]  ;;  %v3371_v44 = vpack.c.bf16 %v449_v39, %v448_v36  ;;  %v450_v46 = vld [vmem:[%s3315_s25 + $0x50] sm:$0xff] }
  0x76   : > { %v2820_v42 = vld [vmem:[#allocation7 + $0x20] sm:$0xff]   ;;  %v3373_v45 = vpack.c.bf16 %v465_v41, %v464_v40  ;;  %v451_v47 = vld [vmem:[%s3315_s25 + $0x58] sm:$0xff]  ;;  %v466_v48 = vld [vmem:[%s3315_s25 + $0xd0] sm:$0xff]  ;;  %p2946_p13 = pnand %p2945_p11, %p2939_p2 }
  0x77   : > { %v2821_v43 = vld [vmem:[#allocation8 + $0x20] sm:$0xff]   ;;  %v467_v49 = vld [vmem:[%s3315_s25 + $0xd8] sm:$0xff]  ;;  %v477_v53 = vpack.c.bf16 %v451_v47, %v450_v46  ;;  %v453_v55 = vld [vmem:[%s3315_s25 + $0x68] sm:$0xff] }
  0x78   : > { %2528 = vmatpush3.bf16.msra.mxu0 %v2809_v3  ;;  %2676 = vmatpush3.bf16.msra.mxu1 %v2809_v3  ;;  %v2822_v50 = vld [vmem:[#allocation7 + $0x18] sm:$0xff]   ;;  %v452_v52 = vld [vmem:[%s3315_s25 + $0x60] sm:$0xff]  ;;  %v3384_v54 = vpack.c.bf16 %v467_v49, %v466_v48  ;;  %v469_v57 = vld [vmem:[%s3315_s25 + $0xe8] sm:$0xff] }
  0x79   : > { %2529 = vmatprep.subr.bf16.mxu0 %v2810_v10  ;;  %2669 = vmatprep.subr.bf16.mxu1 %v2810_v10  ;;  %v2823_v51 = vld [vmem:[#allocation8 + $0x18] sm:$0xff]   ;;  %v468_v56 = vld [vmem:[%s3315_s25 + $0xe0] sm:$0xff]  ;;  %v2824_v58 = vld [vmem:[#allocation7 + $0x10] sm:$0xff]   ;;  %v478_v60 = vpack.c.bf16 %v453_v55, %v452_v52 }
  0x7a   : > { %v2825_v59 = vld [vmem:[#allocation8 + $0x10] sm:$0xff]   ;;  %v486_v61 = vpack.c.bf16 %v469_v57, %v468_v56  ;;  %v455_v63 = vld [vmem:[%s3315_s25 + $0x78] sm:$0xff]  ;;  %v2826_v2 = vld [vmem:[#allocation7 + $0x8] sm:$0xff]  }
  0x7b   : > { %v454_v62 = vld [vmem:[%s3315_s25 + $0x70] sm:$0xff]  ;;  %v471_v1 = vld [vmem:[%s3315_s25 + $0xf8] sm:$0xff]  ;;  %v2827_v3 = vld [vmem:[#allocation8 + $0x8] sm:$0xff]  }
  0x7c   : > { %2530 = vmatpush3.bf16.msra.mxu0 %v2810_v10  ;;  %2677 = vmatpush3.bf16.msra.mxu1 %v2810_v10  ;;  %v470_v0 = vld [vmem:[%s3315_s25 + $0xf0] sm:$0xff]  ;;  %v479_v4 = vpack.c.bf16 %v455_v63, %v454_v62  ;;  %v2828_v6 = vld [vmem:[#allocation7] sm:$0xff]   ;;  %s1665_s25 = scalar_lea.sflag [#allocation4], %s3311_s8 }
  0x7d   : > { %2531 = vmatprep.subr.bf16.mxu0 %v2811_v11  ;;  %2670 = vmatprep.subr.bf16.mxu1 %v2811_v11  ;;  %v487_v5 = vpack.c.bf16 %v471_v1, %v470_v0  ;;  %v2829_v8 = vld [vmem:[#allocation8] sm:$0xff]  }
  0x7e   : > { %v3419_v10 = vld [vmem:[%s3727_s2] ss:$0 sm:$0xff] }
  0x80   : > { %2532 = vmatpush3.bf16.msra.mxu0 %v2811_v11  ;;  %2678 = vmatpush3.bf16.msra.mxu1 %v2811_v11 }
  0x81   : > { %2533 = vmatprep.subr.bf16.mxu0 %v2812_v12  ;;  %2671 = vmatprep.subr.bf16.mxu1 %v2812_v12 }
  0x84   : > { %2534 = vmatpush3.bf16.msra.mxu0 %v2812_v12  ;;  %2679 = vmatpush3.bf16.msra.mxu1 %v2812_v12 }
  0x85   : > { %2535 = vmatprep.subr.bf16.mxu0 %v2813_v13  ;;  %2672 = vmatprep.subr.bf16.mxu1 %v2813_v13 }
  0x88   : > { %2536 = vmatpush3.bf16.msra.mxu0 %v2813_v13  ;;  %2680 = vmatpush3.bf16.msra.mxu1 %v2813_v13 }
  0x89   : > { %2569 = vmatprep.subr.bf16.mxu1 %v2814_v18  ;;  %2617 = vmatprep.subr.bf16.mxu0 %v2815_v19 }
  0x8b   : > { %2538 = vmatmul.mubr.bf16.vlgmr.msra.gmra.mxu0 %v3345_v22  ;;  %2554 = vmatmul.mubr.bf16.vlgmr.msra.gmra.mxu1 %v3347_v23 }
  0x8c   : > { %2570 = vmatpush3.bf16.msra.mxu1 %v2814_v18  ;;  %2618 = vmatpush3.bf16.msra.mxu0 %v2815_v19 }
  0x8d   : > { %2571 = vmatprep.subr.bf16.mxu1 %v2816_v26  ;;  %2619 = vmatprep.subr.bf16.mxu0 %v2817_v27 }
  0x8e   : > { %2541 = vmatprep.mubr.bf16.mxu0 %v3351_v28  ;;  %2557 = vmatprep.mubr.bf16.mxu1 %v3353_v29 }
  0x90   : > { %2572 = vmatpush3.bf16.msra.mxu1 %v2816_v26  ;;  %2620 = vmatpush3.bf16.msra.mxu0 %v2817_v27 }
  0x91   : > { %2573 = vmatprep.subr.bf16.mxu1 %v2818_v34  ;;  %2621 = vmatprep.subr.bf16.mxu0 %v2819_v35 }
  0x93   : > { %2542 = vmatmul.mubr.bf16.gmra.mxu0 %v3364_v37  ;;  %2558 = vmatmul.mubr.bf16.gmra.mxu1 %v3366_v38 }
  0x94   : > { %2574 = vmatpush3.bf16.msra.mxu1 %v2818_v34  ;;  %2622 = vmatpush3.bf16.msra.mxu0 %v2819_v35 }
  0x95   : > { %2575 = vmatprep.subr.bf16.mxu1 %v2820_v42  ;;  %2623 = vmatprep.subr.bf16.mxu0 %v2821_v43 }
  0x96   : > { %2545 = vmatprep.mubr.bf16.mxu0 %v3371_v44  ;;  %2561 = vmatprep.mubr.bf16.mxu1 %v3373_v45 }
  0x98   : > { %2576 = vmatpush3.bf16.msra.mxu1 %v2820_v42  ;;  %2624 = vmatpush3.bf16.msra.mxu0 %v2821_v43 }
  0x99   : > { %2577 = vmatprep.subr.bf16.mxu1 %v2822_v50  ;;  %2625 = vmatprep.subr.bf16.mxu0 %v2823_v51 }
  0x9b   : > { %2546 = vmatmul.mubr.bf16.gmra.mxu0 %v477_v53  ;;  %2562 = vmatmul.mubr.bf16.gmra.mxu1 %v3384_v54 }
  0x9c   : > { %2578 = vmatpush3.bf16.msra.mxu1 %v2822_v50  ;;  %2626 = vmatpush3.bf16.msra.mxu0 %v2823_v51 }
  0x9d   : > { %2579 = vmatprep.subr.bf16.mxu1 %v2824_v58  ;;  %2627 = vmatprep.subr.bf16.mxu0 %v2825_v59 }
  0x9e   : > { %2549 = vmatprep.mubr.bf16.mxu0 %v478_v60  ;;  %2565 = vmatprep.mubr.bf16.mxu1 %v486_v61 }
  0xa0   : > { %2580 = vmatpush3.bf16.msra.mxu1 %v2824_v58  ;;  %2628 = vmatpush3.bf16.msra.mxu0 %v2825_v59 }
  0xa1   : > { %2581 = vmatprep.subr.bf16.mxu1 %v2826_v2  ;;  %2629 = vmatprep.subr.bf16.mxu0 %v2827_v3 }
  0xa3   : > { %2550 = vmatmul.mubr.bf16.gmra.mxu0 %v479_v4  ;;  %2566 = vmatmul.mubr.bf16.gmra.mxu1 %v487_v5 }
  0xa4   : > { %2582 = vmatpush3.bf16.msra.mxu1 %v2826_v2  ;;  %2630 = vmatpush3.bf16.msra.mxu0 %v2827_v3 }
  0xa5   : > { %2583 = vmatprep.subr.bf16.mxu1 %v2828_v6  ;;  %2631 = vmatprep.subr.bf16.mxu0 %v2829_v8 }
  0xa6   : > { %2585 = vmatprep.mubr.bf16.mxu1 %v3332_v7  ;;  %2633 = vmatprep.mubr.bf16.mxu0 %v3332_v7 }
  0xa8   : > { %2584 = vmatpush3.bf16.msra.mxu1 %v2828_v6  ;;  %2632 = vmatpush3.bf16.msra.mxu0 %v2829_v8 }
  0xab   : > { %2586 = vmatmul.mubr.bf16.vlgmr.msra.gmra.mxu1 %v3345_v22  ;;  %2634 = vmatmul.mubr.bf16.vlgmr.msra.gmra.mxu0 %v3345_v22 }
  0xac   : > { %2589 = vmatprep.mubr.bf16.mxu1 %v3351_v28  ;;  %2637 = vmatprep.mubr.bf16.mxu0 %v3351_v28 }
  0xb3   : > { %2590 = vmatmul.mubr.bf16.gmra.mxu1 %v3364_v37  ;;  %2638 = vmatmul.mubr.bf16.gmra.mxu0 %v3364_v37 }
  0xb4   : > { %2593 = vmatprep.mubr.bf16.mxu1 %v3371_v44  ;;  %2641 = vmatprep.mubr.bf16.mxu0 %v3371_v44 }
  0xbb   : > { %2594 = vmatmul.mubr.bf16.gmra.mxu1 %v477_v53  ;;  %2642 = vmatmul.mubr.bf16.gmra.mxu0 %v477_v53 }
  0xbc   : > { %2597 = vmatprep.mubr.bf16.mxu1 %v478_v60  ;;  %2645 = vmatprep.mubr.bf16.mxu0 %v478_v60 }
  0xc3   : > { %2598 = vmatmul.mubr.bf16.gmra.mxu1 %v479_v4  ;;  %2646 = vmatmul.mubr.bf16.gmra.mxu0 %v479_v4 }
  0xc4   : > { %2601 = vmatprep.mubr.bf16.mxu1 %v3335_v9  ;;  %2649 = vmatprep.mubr.bf16.mxu0 %v3335_v9 }
  0xcb   : > { %2602 = vmatmul.mubr.bf16.gmra.mxu1 %v3347_v23  ;;  %2650 = vmatmul.mubr.bf16.gmra.mxu0 %v3347_v23 }
  0xcc   : > { %2605 = vmatprep.mubr.bf16.mxu1 %v3353_v29  ;;  %2653 = vmatprep.mubr.bf16.mxu0 %v3353_v29 }
  0xd3   : > { %2606 = vmatmul.mubr.bf16.gmra.mxu1 %v3366_v38  ;;  %2654 = vmatmul.mubr.bf16.gmra.mxu0 %v3366_v38 }
  0xd4   : > { %2609 = vmatprep.mubr.bf16.mxu1 %v3373_v45  ;;  %2657 = vmatprep.mubr.bf16.mxu0 %v3373_v45 }
  0xdb   : > { %2610 = vmatmul.mubr.bf16.gmra.mxu1 %v3384_v54  ;;  %2658 = vmatmul.mubr.bf16.gmra.mxu0 %v3384_v54 }
  0xdc   : > { %2613 = vmatprep.mubr.bf16.mxu1 %v486_v61  ;;  %2661 = vmatprep.mubr.bf16.mxu0 %v486_v61 }
  0xe3   : > { %2614 = vmatmul.mubr.bf16.gmra.mxu1 %v487_v5  ;;  %2662 = vmatmul.mubr.bf16.gmra.mxu0 %v487_v5 }
 0x14b   : > { %v2539_v7 = vpop.f32.mrf.mxu0  ;;  %v2555_v9 = vpop.f32.mrf.mxu1 }
 0x14c   : > { %v602_v15 = vadd.f32 %v2539_v7, %v3419_v10  ;;  %v666_v16 = vadd.f32 %v2555_v9, %v3419_v10 }
 0x14d   : > { %v593_v11 = vpop.f32.mrf.mxu0  ;;  %v657_v12 = vpop.f32.mrf.mxu1 }
 0x14e   : > { %v594_v19 = vadd.f32 %v3419_v10, %v593_v11  ;;  %v658_v20 = vadd.f32 %v3419_v10, %v657_v12 }
 0x14f   : > { %v2540_v13 = vpop.f32.mrf.mxu0  ;;  %v2556_v14 = vpop.f32.mrf.mxu1 }
 0x150   : > { %v605_v17 = vadd.f32 %v2540_v13, %v3419_v10  ;;  %v669_v18 = vadd.f32 %v2556_v14, %v3419_v10 }
 0x151   : > { %v596_v21 = vpop.f32.mrf.mxu0  ;;  %v660_v22 = vpop.f32.mrf.mxu1 }
 0x152   : > { %v2172_v23 = vpack.c.bf16 %v605_v17, %v602_v15  ;;  %v2212_v24 = vpack.c.bf16 %v669_v18, %v666_v16  ;;  %v597_v25 = vadd.f32 %v3419_v10, %v596_v21  ;;  %v661_v26 = vadd.f32 %v3419_v10, %v660_v22 }
 0x153   : > { %v2543_v27 = vpop.f32.mrf.mxu0  ;;  %v2559_v28 = vpop.f32.mrf.mxu1 }
 0x154   : > { %2404 = vst [vmem:[%s3433_s21 + $0x8] sm:$0xff] %v2172_v23   ;;  %2412 = vst [vmem:[%s3433_s21 + $0x48] sm:$0xff] %v2212_v24   ;;  %v2167_v29 = vpack.c.bf16 %v597_v25, %v594_v19  ;;  %v2207_v30 = vpack.c.bf16 %v661_v26, %v658_v20  ;;  %v618_v35 = vadd.f32 %v2543_v27, %v3419_v10 }
 0x155   : > { %v609_v31 = vpop.f32.mrf.mxu0  ;;  %v673_v32 = vpop.f32.mrf.mxu1  ;;  %v682_v36 = vadd.f32 %v2559_v28, %v3419_v10  ;;  %v3494_v28 = vld [vmem:[%s3772_s22] ss:$0 sm:$0xff] }
 0x156   : > { %2168 = vst [vmem:[%s3433_s21] sm:$0xff] %v2167_v29   ;;  %2411 = vst [vmem:[%s3433_s21 + $0x40] sm:$0xff] %v2207_v30   ;;  %v610_v39 = vadd.f32 %v3419_v10, %v609_v31  ;;  %v674_v40 = vadd.f32 %v3419_v10, %v673_v32 }
 0x157   : > { %v2544_v33 = vpop.f32.mrf.mxu0  ;;  %v2560_v34 = vpop.f32.mrf.mxu1 }
 0x158   : > { %v621_v37 = vadd.f32 %v2544_v33, %v3419_v10  ;;  %v685_v38 = vadd.f32 %v2560_v34, %v3419_v10 }
 0x159   : > { %v612_v41 = vpop.f32.mrf.mxu0  ;;  %v676_v42 = vpop.f32.mrf.mxu1 }
 0x15a   : > { %v2182_v43 = vpack.c.bf16 %v621_v37, %v618_v35  ;;  %v2222_v44 = vpack.c.bf16 %v685_v38, %v682_v36  ;;  %v613_v45 = vadd.f32 %v3419_v10, %v612_v41  ;;  %v677_v46 = vadd.f32 %v3419_v10, %v676_v42 }
 0x15b   : > { %v2547_v47 = vpop.f32.mrf.mxu0  ;;  %v2563_v48 = vpop.f32.mrf.mxu1 }
 0x15c   : > { %2406 = vst [vmem:[%s3433_s21 + $0x18] sm:$0xff] %v2182_v43   ;;  %2414 = vst [vmem:[%s3433_s21 + $0x58] sm:$0xff] %v2222_v44   ;;  %v2177_v49 = vpack.c.bf16 %v613_v45, %v610_v39  ;;  %v2217_v50 = vpack.c.bf16 %v677_v46, %v674_v40  ;;  %v634_v55 = vadd.f32 %v2547_v47, %v3419_v10 }
 0x15d   : > { %v625_v51 = vpop.f32.mrf.mxu0  ;;  %v689_v52 = vpop.f32.mrf.mxu1  ;;  %v698_v56 = vadd.f32 %v2563_v48, %v3419_v10 }
 0x15e   : > { %2405 = vst [vmem:[%s3433_s21 + $0x10] sm:$0xff] %v2177_v49   ;;  %2413 = vst [vmem:[%s3433_s21 + $0x50] sm:$0xff] %v2217_v50   ;;  %v626_v59 = vadd.f32 %v3419_v10, %v625_v51  ;;  %v690_v60 = vadd.f32 %v3419_v10, %v689_v52 }
 0x15f   : > { %v2548_v53 = vpop.f32.mrf.mxu0  ;;  %v2564_v54 = vpop.f32.mrf.mxu1 }
 0x160   : > { %v637_v57 = vadd.f32 %v2548_v53, %v3419_v10  ;;  %v701_v58 = vadd.f32 %v2564_v54, %v3419_v10 }
 0x161   : > { %v628_v61 = vpop.f32.mrf.mxu0  ;;  %v692_v62 = vpop.f32.mrf.mxu1 }
 0x162   : > { %v2192_v63 = vpack.c.bf16 %v637_v57, %v634_v55  ;;  %v2232_v0 = vpack.c.bf16 %v701_v58, %v698_v56  ;;  %v629_v1 = vadd.f32 %v3419_v10, %v628_v61  ;;  %v693_v2 = vadd.f32 %v3419_v10, %v692_v62 }
 0x163   : > { %v2551_v3 = vpop.f32.mrf.mxu0  ;;  %v2567_v4 = vpop.f32.mrf.mxu1 }
 0x164   : > { %2408 = vst [vmem:[%s3433_s21 + $0x28] sm:$0xff] %v2192_v63   ;;  %2416 = vst [vmem:[%s3433_s21 + $0x68] sm:$0xff] %v2232_v0   ;;  %v2187_v5 = vpack.c.bf16 %v629_v1, %v626_v59  ;;  %v2227_v6 = vpack.c.bf16 %v693_v2, %v690_v60  ;;  %v650_v12 = vadd.f32 %v2551_v3, %v3419_v10 }
 0x165   : > { %v641_v8 = vpop.f32.mrf.mxu0  ;;  %v705_v7 = vpop.f32.mrf.mxu1  ;;  %v714_v13 = vadd.f32 %v2567_v4, %v3419_v10 }
 0x166   : > { %2407 = vst [vmem:[%s3433_s21 + $0x20] sm:$0xff] %v2187_v5   ;;  %2415 = vst [vmem:[%s3433_s21 + $0x60] sm:$0xff] %v2227_v6   ;;  %v642_v16 = vadd.f32 %v3419_v10, %v641_v8  ;;  %v706_v17 = vadd.f32 %v3419_v10, %v705_v7 }
 0x167   : > { %v2552_v9 = vpop.f32.mrf.mxu0  ;;  %v2568_v11 = vpop.f32.mrf.mxu1 }
 0x168   : > { %v653_v14 = vadd.f32 %v2552_v9, %v3419_v10  ;;  %v717_v15 = vadd.f32 %v2568_v11, %v3419_v10 }
 0x169   : > { %v644_v18 = vpop.f32.mrf.mxu0  ;;  %v708_v19 = vpop.f32.mrf.mxu1 }
 0x16a   : > { %v2202_v20 = vpack.c.bf16 %v653_v14, %v650_v12  ;;  %v2242_v21 = vpack.c.bf16 %v717_v15, %v714_v13  ;;  %v645_v22 = vadd.f32 %v3419_v10, %v644_v18  ;;  %v709_v23 = vadd.f32 %v3419_v10, %v708_v19  ;;  %v3489_v10 = vld [vmem:[%s3771_s28] ss:$0 sm:$0xff] }
 0x16b   : > { %v2587_v24 = vpop.f32.mrf.mxu1  ;;  %v2635_v25 = vpop.f32.mrf.mxu0 }
 0x16c   : > { %2410 = vst [vmem:[%s3433_s21 + $0x38] sm:$0xff] %v2202_v20   ;;  %2418 = vst [vmem:[%s3433_s21 + $0x78] sm:$0xff] %v2242_v21   ;;  %v2197_v26 = vpack.c.bf16 %v645_v22, %v642_v16  ;;  %v2237_v27 = vpack.c.bf16 %v709_v23, %v706_v17 }
 0x16d   : > { %v985_v29 = vpop.f32.mrf.mxu1  ;;  %v1377_v30 = vpop.f32.mrf.mxu0 }
 0x16e   : > { %2409 = vst [vmem:[%s3433_s21 + $0x30] sm:$0xff] %v2197_v26   ;;  %2417 = vst [vmem:[%s3433_s21 + $0x70] sm:$0xff] %v2237_v27  }
 0x16f   : > { %v2588_v31 = vpop.f32.mrf.mxu1  ;;  %v2636_v32 = vpop.f32.mrf.mxu0 }
 0x170   : > { %2949 = shalt.err (!%p2946_p13)
}
 0x171   : > { %s2950_s21 = scalar_lea.hbm %s3482_s1, 2048  ;;  %s2954_s3 = scalar_lea.hbm %s3732_s7, 8192 }
 0x172   : > { %p2951_p3 = scmp.ne.s32.totalorder %s3482_s1, %s2950_s21  ;;  %p2955_p8 = scmp.lt.s32.totalorder %s3482_s1, %s3732_s7 }
 0x173   : > { %p2956_p7 = scmp.lt.s32.totalorder %s2954_s3, %s2950_s21 }
 0x174   : > { %p2952_p10 = pnand %p2951_p3, %p3274_p0 }
 0x175   : > { %p2957_p1 = por %p2956_p7, %p2955_p8 }
 0x176   : > { %p2953_p5 = pneg %p2952_p10 }
 0x178   : > { %p2958_p9 = pnand %p2957_p1, %p2953_p5 }
 0x17a   : > { %2961 = shalt.err (!%p2958_p9)
}
 0x17b   : > { %s3107_s28 = smov 64   ;;  %s3108_s4 = smov 4   ;;  %v994_v33 = vadd.f32 %v2587_v24, %v3489_v10  ;;  %v1386_v34 = vadd.f32 %v2635_v25, %v3494_v28  ;;  %v997_v35 = vadd.f32 %v2588_v31, %v3489_v10  ;;  %v1389_v36 = vadd.f32 %v2636_v32, %v3494_v28  ;;  %v988_v39 = vpop.f32.mrf.mxu1  ;;  %v1380_v40 = vpop.f32.mrf.mxu0 }
 0x17c   : > { %2695 = dma.vmem_to_hbm [thread:$0]  (%p3274_p0), %s3484_s13, 2048, %s3482_s1, %s1665_s25, %s3107_s28, %s3107_s28, %s3108_s4   ;;  %v986_v37 = vadd.f32 %v3489_v10, %v985_v29  ;;  %v1378_v38 = vadd.f32 %v3494_v28, %v1377_v30  ;;  %v989_v43 = vadd.f32 %v3489_v10, %v988_v39  ;;  %v1381_v44 = vadd.f32 %v3494_v28, %v1380_v40 }
 0x17d   : > { %v2252_v41 = vpack.c.bf16 %v997_v35, %v994_v33  ;;  %v2332_v42 = vpack.c.bf16 %v1389_v36, %v1386_v34  ;;  %v2591_v45 = vpop.f32.mrf.mxu1  ;;  %v2639_v46 = vpop.f32.mrf.mxu0  ;;  %s3533_s8 = scalar_lea.vmem [#allocation11], %s3422_s19  ;;  %s3537_s13 = scalar_lea.vmem [#allocation13], %s3422_s19 }
 0x17e   : > { %v2247_v47 = vpack.c.bf16 %v989_v43, %v986_v37  ;;  %v2327_v48 = vpack.c.bf16 %v1381_v44, %v1378_v38  ;;  %v1010_v53 = vadd.f32 %v2591_v45, %v3489_v10  ;;  %v1402_v54 = vadd.f32 %v2639_v46, %v3494_v28  ;;  %s1669_s19 = sand.u32 1, %s3202_s17   ;;  %s1708_s1 = sshll.u32 %s3533_s8, 4  ;;  %s3633_s1 = int_to_ptr.vmem [resolvable:$true] %s1708_s1 }
 0x17f   : > { %2419 = vst [vmem:[%s3533_s8 + $0x8] sm:$0xff] %v2252_v41   ;;  %2434 = vst [vmem:[%s3537_s13 + $0x8] sm:$0xff] %v2332_v42   ;;  %v1001_v49 = vpop.f32.mrf.mxu1  ;;  %v1393_v50 = vpop.f32.mrf.mxu0  ;;  %s1726_s14 = sshll.u32 %s3537_s13, 4  ;;  %s3773_s25 = sld [smem:[#allocation28_spill]]  ;;  %s3641_s14 = int_to_ptr.vmem [resolvable:$true] %s1726_s14 }
 0x180   : > { %2248 = vst [vmem:[%s3533_s8] sm:$0xff] %v2247_v47   ;;  %2328 = vst [vmem:[%s3537_s13] sm:$0xff] %v2327_v48   ;;  %v1002_v57 = vadd.f32 %v3489_v10, %v1001_v49  ;;  %v1394_v58 = vadd.f32 %v3494_v28, %v1393_v50  ;;  %s3774_s23 = sld [smem:[#allocation29_spill]]  ;;  %s3645_s27 = scalar_lea.sflag [#allocation12], %s1669_s19 }
 0x181   : > { %v2592_v51 = vpop.f32.mrf.mxu1  ;;  %v2640_v52 = vpop.f32.mrf.mxu0  ;;  %s2962_s18 = scalar_lea.vmem %s3633_s1, 2048  ;;  %s3109_s3 = smov [#allocation11]  }
 0x182   : > { %v1013_v55 = vadd.f32 %v2592_v51, %v3489_v10  ;;  %v1405_v56 = vadd.f32 %v2640_v52, %v3494_v28  ;;  %p2963_p12 = scmp.ne.s32.totalorder %s3633_s1, %s2962_s18  ;;  %s2966_s9 = sshll.u32 %s3109_s3, 4  ;;  %s2967_s9 = int_to_ptr.vmem [resolvable:$false] %s2966_s9 }
 0x183   : > { %v1004_v59 = vpop.f32.mrf.mxu1  ;;  %v1396_v60 = vpop.f32.mrf.mxu0  ;;  %s2968_s26 = scalar_lea.vmem %s2967_s9, 4096  ;;  %p2969_p6 = scmp.lt.s32.totalorder %s3633_s1, %s2967_s9 }
 0x184   : > { %v2262_v61 = vpack.c.bf16 %v1013_v55, %v1010_v53  ;;  %v2342_v62 = vpack.c.bf16 %v1405_v56, %v1402_v54  ;;  %v1005_v63 = vadd.f32 %v3489_v10, %v1004_v59  ;;  %v1397_v0 = vadd.f32 %v3494_v28, %v1396_v60  ;;  %p2964_p2 = pnand %p2963_p12, %p3274_p0  ;;  %p2970_p11 = scmp.lt.s32.totalorder %s2968_s26, %s2962_s18 }
 0x185   : > { %v2595_v1 = vpop.f32.mrf.mxu1  ;;  %v2643_v2 = vpop.f32.mrf.mxu0  ;;  %s3631_s5 = scalar_lea.hbm %s3773_s25, %s3471_s12 }
 0x186   : > { %2421 = vst [vmem:[%s3533_s8 + $0x18] sm:$0xff] %v2262_v61   ;;  %2436 = vst [vmem:[%s3537_s13 + $0x18] sm:$0xff] %v2342_v62   ;;  %v2257_v3 = vpack.c.bf16 %v1005_v63, %v1002_v57  ;;  %v2337_v4 = vpack.c.bf16 %v1397_v0, %v1394_v58  ;;  %v1026_v9 = vadd.f32 %v2595_v1, %v3489_v10  ;;  %s3639_s21 = scalar_lea.hbm %s3774_s23, %s3471_s12  ;;  %p2965_p4 = pneg %p2964_p2 }
 0x187   : > { %v1017_v5 = vpop.f32.mrf.mxu1  ;;  %v1409_v6 = vpop.f32.mrf.mxu0  ;;  %v1418_v11 = vadd.f32 %v2643_v2, %v3494_v28  ;;  %p2971_p13 = por %p2970_p11, %p2969_p6 }
 0x188   : > { %2420 = vst [vmem:[%s3533_s8 + $0x10] sm:$0xff] %v2257_v3   ;;  %2435 = vst [vmem:[%s3537_s13 + $0x10] sm:$0xff] %v2337_v4   ;;  %v1018_v14 = vadd.f32 %v3489_v10, %v1017_v5  ;;  %v1410_v15 = vadd.f32 %v3494_v28, %v1409_v6 }
 0x189   : > { %v2596_v8 = vpop.f32.mrf.mxu1  ;;  %v2644_v7 = vpop.f32.mrf.mxu0  ;;  %p2972_p3 = pnand %p2971_p13, %p2965_p4 }
 0x18a   : > { %v1029_v12 = vadd.f32 %v2596_v8, %v3489_v10  ;;  %v1421_v13 = vadd.f32 %v2644_v7, %v3494_v28 }
 0x18b   : > { %v1020_v16 = vpop.f32.mrf.mxu1  ;;  %v1412_v17 = vpop.f32.mrf.mxu0 }
 0x18c   : > { %v2272_v18 = vpack.c.bf16 %v1029_v12, %v1026_v9  ;;  %v2352_v19 = vpack.c.bf16 %v1421_v13, %v1418_v11  ;;  %v1021_v20 = vadd.f32 %v3489_v10, %v1020_v16  ;;  %v1413_v21 = vadd.f32 %v3494_v28, %v1412_v17 }
 0x18d   : > { %v2599_v22 = vpop.f32.mrf.mxu1  ;;  %v2647_v23 = vpop.f32.mrf.mxu0 }
 0x18e   : > { %2423 = vst [vmem:[%s3533_s8 + $0x28] sm:$0xff] %v2272_v18   ;;  %2438 = vst [vmem:[%s3537_s13 + $0x28] sm:$0xff] %v2352_v19   ;;  %v2267_v24 = vpack.c.bf16 %v1021_v20, %v1018_v14  ;;  %v2347_v25 = vpack.c.bf16 %v1413_v21, %v1410_v15  ;;  %v1042_v31 = vadd.f32 %v2599_v22, %v3489_v10 }
 0x18f   : > { %v1033_v26 = vpop.f32.mrf.mxu1  ;;  %v1425_v27 = vpop.f32.mrf.mxu0  ;;  %v1434_v32 = vadd.f32 %v2647_v23, %v3494_v28 }
 0x190   : > { %2422 = vst [vmem:[%s3533_s8 + $0x20] sm:$0xff] %v2267_v24   ;;  %2437 = vst [vmem:[%s3537_s13 + $0x20] sm:$0xff] %v2347_v25   ;;  %v1034_v35 = vadd.f32 %v3489_v10, %v1033_v26  ;;  %v1426_v36 = vadd.f32 %v3494_v28, %v1425_v27 }
 0x191   : > { %v2600_v29 = vpop.f32.mrf.mxu1  ;;  %v2648_v30 = vpop.f32.mrf.mxu0 }
 0x192   : > { %v1045_v33 = vadd.f32 %v2600_v29, %v3489_v10  ;;  %v1437_v34 = vadd.f32 %v2648_v30, %v3494_v28 }
 0x193   : > { %v1036_v37 = vpop.f32.mrf.mxu1  ;;  %v1428_v38 = vpop.f32.mrf.mxu0 }
 0x194   : > { %v2282_v39 = vpack.c.bf16 %v1045_v33, %v1042_v31  ;;  %v2362_v40 = vpack.c.bf16 %v1437_v34, %v1434_v32  ;;  %v1037_v41 = vadd.f32 %v3489_v10, %v1036_v37  ;;  %v1429_v42 = vadd.f32 %v3494_v28, %v1428_v38 }
 0x195   : > { %v2603_v43 = vpop.f32.mrf.mxu1  ;;  %v2651_v44 = vpop.f32.mrf.mxu0 }
 0x196   : > { %2425 = vst [vmem:[%s3533_s8 + $0x38] sm:$0xff] %v2282_v39   ;;  %2440 = vst [vmem:[%s3537_s13 + $0x38] sm:$0xff] %v2362_v40   ;;  %v2277_v45 = vpack.c.bf16 %v1037_v41, %v1034_v35  ;;  %v2357_v46 = vpack.c.bf16 %v1429_v42, %v1426_v36  ;;  %v1058_v51 = vadd.f32 %v2603_v43, %v3489_v10 }
 0x197   : > { %v1049_v47 = vpop.f32.mrf.mxu1  ;;  %v1441_v48 = vpop.f32.mrf.mxu0  ;;  %v1450_v52 = vadd.f32 %v2651_v44, %v3494_v28 }
 0x198   : > { %2424 = vst [vmem:[%s3533_s8 + $0x30] sm:$0xff] %v2277_v45   ;;  %2439 = vst [vmem:[%s3537_s13 + $0x30] sm:$0xff] %v2357_v46   ;;  %v1050_v55 = vadd.f32 %v3489_v10, %v1049_v47  ;;  %v1442_v56 = vadd.f32 %v3494_v28, %v1441_v48 }
 0x199   : > { %v2604_v49 = vpop.f32.mrf.mxu1  ;;  %v2652_v50 = vpop.f32.mrf.mxu0 }
 0x19a   : > { %v1061_v53 = vadd.f32 %v2604_v49, %v3489_v10  ;;  %v1453_v54 = vadd.f32 %v2652_v50, %v3494_v28 }
 0x19b   : > { %v1052_v57 = vpop.f32.mrf.mxu1  ;;  %v1444_v58 = vpop.f32.mrf.mxu0 }
 0x19c   : > { %v2292_v59 = vpack.c.bf16 %v1061_v53, %v1058_v51  ;;  %v2372_v60 = vpack.c.bf16 %v1453_v54, %v1450_v52  ;;  %v1053_v61 = vadd.f32 %v3489_v10, %v1052_v57  ;;  %v1445_v62 = vadd.f32 %v3494_v28, %v1444_v58 }
 0x19d   : > { %v2607_v63 = vpop.f32.mrf.mxu1  ;;  %v2655_v0 = vpop.f32.mrf.mxu0 }
 0x19e   : > { %2427 = vst [vmem:[%s3533_s8 + $0x48] sm:$0xff] %v2292_v59   ;;  %2442 = vst [vmem:[%s3537_s13 + $0x48] sm:$0xff] %v2372_v60   ;;  %v2287_v1 = vpack.c.bf16 %v1053_v61, %v1050_v55  ;;  %v2367_v2 = vpack.c.bf16 %v1445_v62, %v1442_v56  ;;  %v1074_v8 = vadd.f32 %v2607_v63, %v3489_v10 }
 0x19f   : > { %v1065_v3 = vpop.f32.mrf.mxu1  ;;  %v1457_v4 = vpop.f32.mrf.mxu0  ;;  %v1466_v7 = vadd.f32 %v2655_v0, %v3494_v28 }
 0x1a0   : > { %2426 = vst [vmem:[%s3533_s8 + $0x40] sm:$0xff] %v2287_v1   ;;  %2441 = vst [vmem:[%s3537_s13 + $0x40] sm:$0xff] %v2367_v2   ;;  %v1066_v12 = vadd.f32 %v3489_v10, %v1065_v3  ;;  %v1458_v13 = vadd.f32 %v3494_v28, %v1457_v4 }
 0x1a1   : > { %v2608_v5 = vpop.f32.mrf.mxu1  ;;  %v2656_v6 = vpop.f32.mrf.mxu0 }
 0x1a2   : > { %v1077_v9 = vadd.f32 %v2608_v5, %v3489_v10  ;;  %v1469_v11 = vadd.f32 %v2656_v6, %v3494_v28 }
 0x1a3   : > { %v1068_v14 = vpop.f32.mrf.mxu1  ;;  %v1460_v15 = vpop.f32.mrf.mxu0 }
 0x1a4   : > { %v2302_v16 = vpack.c.bf16 %v1077_v9, %v1074_v8  ;;  %v2382_v17 = vpack.c.bf16 %v1469_v11, %v1466_v7  ;;  %v1069_v18 = vadd.f32 %v3489_v10, %v1068_v14  ;;  %v1461_v19 = vadd.f32 %v3494_v28, %v1460_v15 }
 0x1a5   : > { %v2611_v20 = vpop.f32.mrf.mxu1  ;;  %v2659_v21 = vpop.f32.mrf.mxu0 }
 0x1a6   : > { %2429 = vst [vmem:[%s3533_s8 + $0x58] sm:$0xff] %v2302_v16   ;;  %2444 = vst [vmem:[%s3537_s13 + $0x58] sm:$0xff] %v2382_v17   ;;  %v2297_v22 = vpack.c.bf16 %v1069_v18, %v1066_v12  ;;  %v2377_v23 = vpack.c.bf16 %v1461_v19, %v1458_v13  ;;  %v1090_v29 = vadd.f32 %v2611_v20, %v3489_v10 }
 0x1a7   : > { %v1081_v24 = vpop.f32.mrf.mxu1  ;;  %v1473_v25 = vpop.f32.mrf.mxu0  ;;  %v1482_v30 = vadd.f32 %v2659_v21, %v3494_v28 }
 0x1a8   : > { %2428 = vst [vmem:[%s3533_s8 + $0x50] sm:$0xff] %v2297_v22   ;;  %2443 = vst [vmem:[%s3537_s13 + $0x50] sm:$0xff] %v2377_v23   ;;  %v1082_v33 = vadd.f32 %v3489_v10, %v1081_v24  ;;  %v1474_v34 = vadd.f32 %v3494_v28, %v1473_v25 }
 0x1a9   : > { %v2612_v26 = vpop.f32.mrf.mxu1  ;;  %v2660_v27 = vpop.f32.mrf.mxu0 }
 0x1aa   : > { %v1093_v31 = vadd.f32 %v2612_v26, %v3489_v10  ;;  %v1485_v32 = vadd.f32 %v2660_v27, %v3494_v28 }
 0x1ab   : > { %v1084_v35 = vpop.f32.mrf.mxu1  ;;  %v1476_v36 = vpop.f32.mrf.mxu0 }
 0x1ac   : > { %v2312_v37 = vpack.c.bf16 %v1093_v31, %v1090_v29  ;;  %v2392_v38 = vpack.c.bf16 %v1485_v32, %v1482_v30  ;;  %v1085_v39 = vadd.f32 %v3489_v10, %v1084_v35  ;;  %v1477_v40 = vadd.f32 %v3494_v28, %v1476_v36 }
 0x1ad   : > { %v2615_v41 = vpop.f32.mrf.mxu1  ;;  %v2663_v42 = vpop.f32.mrf.mxu0 }
 0x1ae   : > { %2431 = vst [vmem:[%s3533_s8 + $0x68] sm:$0xff] %v2312_v37   ;;  %2446 = vst [vmem:[%s3537_s13 + $0x68] sm:$0xff] %v2392_v38   ;;  %v2307_v43 = vpack.c.bf16 %v1085_v39, %v1082_v33  ;;  %v2387_v44 = vpack.c.bf16 %v1477_v40, %v1474_v34  ;;  %v1106_v49 = vadd.f32 %v2615_v41, %v3489_v10 }
 0x1af   : > { %v1097_v45 = vpop.f32.mrf.mxu1  ;;  %v1489_v46 = vpop.f32.mrf.mxu0  ;;  %v1498_v50 = vadd.f32 %v2663_v42, %v3494_v28 }
 0x1b0   : > { %2430 = vst [vmem:[%s3533_s8 + $0x60] sm:$0xff] %v2307_v43   ;;  %2445 = vst [vmem:[%s3537_s13 + $0x60] sm:$0xff] %v2387_v44   ;;  %v1098_v53 = vadd.f32 %v3489_v10, %v1097_v45  ;;  %v1490_v54 = vadd.f32 %v3494_v28, %v1489_v46 }
 0x1b1   : > { %v2616_v47 = vpop.f32.mrf.mxu1  ;;  %v2664_v48 = vpop.f32.mrf.mxu0 }
 0x1b2   : > { %v1109_v51 = vadd.f32 %v2616_v47, %v3489_v10  ;;  %v1501_v52 = vadd.f32 %v2664_v48, %v3494_v28 }
 0x1b3   : > { %v1100_v55 = vpop.f32.mrf.mxu1  ;;  %v1492_v56 = vpop.f32.mrf.mxu0 }
 0x1b4   : > { %v2322_v57 = vpack.c.bf16 %v1109_v51, %v1106_v49  ;;  %v2402_v58 = vpack.c.bf16 %v1501_v52, %v1498_v50  ;;  %v1101_v59 = vadd.f32 %v3489_v10, %v1100_v55  ;;  %v1493_v60 = vadd.f32 %v3494_v28, %v1492_v56 }
 0x1b6   : > { %2433 = vst [vmem:[%s3533_s8 + $0x78] sm:$0xff] %v2322_v57   ;;  %2448 = vst [vmem:[%s3537_s13 + $0x78] sm:$0xff] %v2402_v58   ;;  %v2317_v61 = vpack.c.bf16 %v1101_v59, %v1098_v53  ;;  %v2397_v62 = vpack.c.bf16 %v1493_v60, %v1490_v54 }
 0x1b8   : > { %2432 = vst [vmem:[%s3533_s8 + $0x70] sm:$0xff] %v2317_v61   ;;  %2447 = vst [vmem:[%s3537_s13 + $0x70] sm:$0xff] %v2397_v62  }
 0x1b9   : > { %2975 = shalt.err (!%p2972_p3)
}
 0x1ba   : > { %s2976_s12 = scalar_lea.hbm %s3631_s5, 2048  ;;  %s2980_s19 = scalar_lea.hbm %s3773_s25, 8192 }
 0x1bb   : > { %p2977_p10 = scmp.ne.s32.totalorder %s3631_s5, %s2976_s12  ;;  %p2981_p7 = scmp.lt.s32.totalorder %s3631_s5, %s3773_s25 }
 0x1bc   : > { %p2982_p1 = scmp.lt.s32.totalorder %s2980_s19, %s2976_s12 }
 0x1bd   : > { %p2978_p5 = pnand %p2977_p10, %p3274_p0 }
 0x1be   : > { %p2983_p9 = por %p2982_p1, %p2981_p7 }
 0x1bf   : > { %p2979_p8 = pneg %p2978_p5 }
 0x1c1   : > { %p2984_p12 = pnand %p2983_p9, %p2979_p8 }
 0x1c3   : > { %2987 = shalt.err (!%p2984_p12)
}
 0x1c4   : > { %2696 = dma.vmem_to_hbm [thread:$0]  (%p3274_p0), %s3633_s1, 2048, %s3631_s5, %s3645_s27, %s3107_s28, %s3107_s28, %s3108_s4  }
 0x1c5   : > { %s2988_s6 = scalar_lea.vmem %s3641_s14, 2048  ;;  %s3110_s20 = smov [#allocation13]  }
 0x1c6   : > { %p2989_p2 = scmp.ne.s32.totalorder %s3641_s14, %s2988_s6  ;;  %s2992_s18 = sshll.u32 %s3110_s20, 4  ;;  %s2993_s18 = int_to_ptr.vmem [resolvable:$false] %s2992_s18 }
 0x1c7   : > { %s2994_s3 = scalar_lea.vmem %s2993_s18, 4096  ;;  %p2995_p11 = scmp.lt.s32.totalorder %s3641_s14, %s2993_s18 }
 0x1c8   : > { %p2990_p4 = pnand %p2989_p2, %p3274_p0  ;;  %p2996_p13 = scmp.lt.s32.totalorder %s2994_s3, %s2988_s6 }
 0x1ca   : > { %p2991_p6 = pneg %p2990_p4  ;;  %p2997_p3 = por %p2996_p13, %p2995_p11 }
 0x1cc   : > { %p2998_p10 = pnand %p2997_p3, %p2991_p6 }
 0x1ce   : > { %3001 = shalt.err (!%p2998_p10)
}
 0x1cf   : > { %s3002_s9 = scalar_lea.hbm %s3639_s21, 2048  ;;  %s3006_s26 = scalar_lea.hbm %s3774_s23, 8192 }
 0x1d0   : > { %p3003_p5 = scmp.ne.s32.totalorder %s3639_s21, %s3002_s9  ;;  %p3007_p1 = scmp.lt.s32.totalorder %s3639_s21, %s3774_s23 }
 0x1d1   : > { %p3008_p9 = scmp.lt.s32.totalorder %s3006_s26, %s3002_s9 }
 0x1d2   : > { %p3004_p8 = pnand %p3003_p5, %p3274_p0 }
 0x1d3   : > { %p3009_p12 = por %p3008_p9, %p3007_p1 }
 0x1d4   : > { %p3005_p7 = pneg %p3004_p8 }
 0x1d6   : > { %p3010_p2 = pnand %p3009_p12, %p3005_p7 }
 0x1d8   : > { %3013 = shalt.err (!%p3010_p2)
}
 0x1d9   : > { %2697 = dma.vmem_to_hbm [thread:$0]  (%p3274_p0), %s3641_s14, 2048, %s3639_s21, %s3645_s27, %s3107_s28, %s3107_s28, %s3108_s4  }
 0x1da PF: > { %s3775_s13 = sld [smem:[#allocation19_spill]]  ;;  %p2732_p4 = scmp.ge.s32.totalorder %s3096_s16, 2 }
 0x1db   : > { %s3776_s19 = sld [smem:[#allocation21_spill]] }
 0x1e0   : > { %s1741_s17 = sand.u32 1, %s3775_s13  }
 0x1e1   : > { %p3777_p6 = scmp.ne.s32.totalorder %s3776_s19, 0  ;;  %s1742_s22 = scalar_lea.sflag [#allocation4], %s1741_s17 }
 0x1e3   : > { %p2716_p11 = pnand %p2732_p4, %p3777_p6 }
 0x1e5   : > { %p2717_p13 = pneg %p2716_p11 }
 0x1e7   : > { %3059 = dma.done.wait (%p2717_p13), %s1742_s22, 2048  }
 0x1e8   : > { %3061 = vsyncadd (%p2717_p13), %s1742_s22, 4294965248  ;;  %s3778_s29 = sadd.s32 4294967294, %s3096_s16  }
 0x1e9   : > { %s1750_s6 = sand.u32 1, %s3778_s29  }
 0x1ea   : > { %s1751_s20 = scalar_lea.sflag [#allocation12], %s1750_s6 }
 0x1eb   : > { %3063 = dma.done.wait (%p2717_p13), %s1751_s20, 4096  }
 0x1ec   : > { %3065 = vsyncadd (%p2717_p13), %s1751_s20, 4294963200  ;;  %s31_s16 = sadd.s32 1, %s3096_s16   ;;  %s3779_s28 = smov %s3291_s30 }
 0x1ed   : > { %p28_p0 = scmp.ge.s32.totalorder %s31_s16, 6   ;;  %s3780_s12 = sld [smem:[#allocation20_spill]] }
 0x1ee   : > { %s3781_s14 = sld [smem:[#allocation22_spill]]  ;;  %s3782_s30 = smov %s3072_s10 }
 0x1ef   : > { %s3783_s10 = smov %s3076_s11  ;;  %s3784_s11 = smov %s3779_s28 }
 0x1f0   : > { %s3785_s13 = smov %s3092_s15  ;;  %s3786_s15 = smov %s3792_s24 }
 0x1f1   :  { %30 = sbr.rel (!%p28_p0) target bundleno = 19 (0x13), region = 137 }
 0x1f6   :  { %1765 = vsyncpa [#allocation3], 1 }
 0x1f7   :  { %1767 = vsyncpa [#allocation3 + $0x1], 1 }
 0x1f8   :  { %1768 = vsyncpa [#allocation6], 1 }
 0x1f9   :  { %1769 = vsyncpa [#allocation9], 1 }
 0x1fa   :  { %1770 = vsyncpa [#allocation4], 1 }
 0x1fb   :  { %1772 = vsyncpa [#allocation4 + $0x1], 1 }
 0x1fc   :  { %1773 = vsyncpa [#allocation12], 1 }
 0x1fd   :  { %1775 = vsyncpa [#allocation12 + $0x1], 1 }

</bundles_post_ra>
